<compile_context>
chip_gen: v6e
topology: v6e:2x2x1
jax: 0.10.0
libtpu: 0.0.40
codegen_flags: <defaults>
</compile_context>

<pallas_src>
import jax
import jax.numpy as jnp
from jax import lax
from jax.experimental import pallas as pl
from jax.experimental.pallas import tpu as pltpu

LANE = 128     # vreg lane width
SUBLANE = 8    # vreg sublane count


def _round_up(x, m):
    return (x + m - 1) // m * m


def _linear_kernel(x_ref, w_ref, b_ref, o_ref, acc_ref):
    # x_ref: (M_pad, tk)         -- activation K-slice
    # w_ref: (Nc_pad, tk)        -- UNtransposed weight K-slice (PyTorch layout)
    # b_ref: (1, Nc_pad)         -- padded bias
    # o_ref: (M_pad, Nc_pad)     -- lane-dense output tile (resident across K)
    # acc_ref: VMEM f32 accumulator
    kk = pl.program_id(0)

    @pl.when(kk == 0)
    def _():
        acc_ref[...] = jnp.zeros_like(acc_ref)

    # out[m, n] += sum_k x[m, k] * w[n, k]  (contract both on their last dim)
    acc_ref[...] += lax.dot_general(
        x_ref[...],
        w_ref[...],
        dimension_numbers=(((1,), (1,)), ((), ())),
        preferred_element_type=jnp.float32,
    )

    @pl.when(kk == pl.num_programs(0) - 1)
    def _():
        o_ref[...] = (acc_ref[...] + b_ref[...]).astype(o_ref.dtype)


def prepare_guided_params(weight, bias, *, tk=512, param_dtype=jnp.float32):
    """One-time (outside the hot path) padding of the Linear parameters.

    weight: (num_classes, K)  PyTorch nn.Linear layout (NOT transposed)
    bias:   (num_classes,)
    Returns (w_pad, b_pad) with classes padded to a multiple of 128 and K
    padded to a multiple of tk. Use param_dtype=jnp.bfloat16 on v6e/v7x to
    halve the weight-streaming bytes if accuracy allows.
    """
    num_classes, k = weight.shape
    nc_pad = max(LANE, _round_up(num_classes, LANE))
    k_pad = _round_up(k, tk)
    w_pad = jnp.zeros((nc_pad, k_pad), param_dtype)
    w_pad = w_pad.at[:num_classes, :k].set(weight.astype(param_dtype))
    b_pad = jnp.zeros((1, nc_pad), jnp.float32)
    b_pad = b_pad.at[0, :num_classes].set(bias.astype(jnp.float32))
    return w_pad, b_pad


def guided_conv1_generator_forward(middle_input, w_pad, b_pad, num_classes, *, tk=512):
    """middle_input: (N, C, H, W); w_pad/b_pad from prepare_guided_params.
    Returns (N, num_classes) float32 == middle_input.view(N,-1) @ W.T + b.
    """
    n = middle_input.shape[0]
    k = 1
    for d in middle_input.shape[1:]:
        k *= d
    nc_pad = w_pad.shape[0]
    k_pad = w_pad.shape[1]

    tk = min(tk, k_pad)
    assert tk % LANE == 0 and k_pad % tk == 0, "tk must be a multiple of 128 dividing padded K"

    m_pad = _round_up(max(n, SUBLANE), SUBLANE)

    # Flatten (identical to torch .view on contiguous NCHW) and pad M/K with
    # zeros (zeros contribute nothing to the contraction).
    x_flat = middle_input.reshape(n, k).astype(w_pad.dtype)
    x_pad = jnp.zeros((m_pad, k_pad), w_pad.dtype).at[:n, :k].set(x_flat)

    grid_k = k_pad // tk
    itemsize = jnp.dtype(w_pad.dtype).itemsize

    cost = pl.CostEstimate(
        flops=2 * m_pad * k_pad * nc_pad,
        transcendentals=0,
        bytes_accessed=(m_pad * k_pad + nc_pad * k_pad) * itemsize
        + (m_pad * nc_pad + nc_pad) * 4,
    )

    out_pad = pl.pallas_call(
        _linear_kernel,
        out_shape=jax.ShapeDtypeStruct((m_pad, nc_pad), jnp.float32),
        grid_spec=pltpu.PrefetchScalarGridSpec(
            num_scalar_prefetch=0,
            grid=(grid_k,),  # reduction axis last (only axis), "arbitrary"
            in_specs=[
                pl.BlockSpec((m_pad, tk), lambda kk: (0, kk)),
                pl.BlockSpec((nc_pad, tk), lambda kk: (0, kk)),
                pl.BlockSpec((1, nc_pad), lambda kk: (0, 0)),
            ],
            out_specs=pl.BlockSpec((m_pad, nc_pad), lambda kk: (0, 0)),
            scratch_shapes=[pltpu.VMEM((m_pad, nc_pad), jnp.float32)],
        ),
        compiler_params=pltpu.CompilerParams(
            dimension_semantics=("arbitrary",),
            # Sized against v7x's 64 MiB physical VMEM; double-buffered tiles
            # here are ~2*(m_pad*tk + nc_pad*tk)*4B << this limit.
            vmem_limit_bytes=32 * 1024 * 1024,
        ),
        cost_estimate=cost,
    )(x_pad, w_pad, b_pad)

    return out_pad[:n, :num_classes]


if __name__ == "__main__":
    # Small shapes consistent with the module: N=2, C=4, H=W=16 -> K=1024, classes=10.
    N, C, H, W = 2, 4, 16, 16
    NUM_CLASSES = 10
    K = C * H * W

    key = jax.random.PRNGKey(0)
    k_x, k_w, k_b = jax.random.split(key, 3)

    middle_input = jax.random.normal(k_x, (N, C, H, W), dtype=jnp.float32)

    # Deterministic init mimicking nn.Linear default: U(-1/sqrt(K), 1/sqrt(K)).
    bound = 1.0 / (K ** 0.5)
    weight = jax.random.uniform(k_w, (NUM_CLASSES, K), dtype=jnp.float32,
                                minval=-bound, maxval=bound)
    bias = jax.random.uniform(k_b, (NUM_CLASSES,), dtype=jnp.float32,
                              minval=-bound, maxval=bound)

    # One-time parameter padding (outside the per-call hot path).
    w_pad, b_pad = prepare_guided_params(weight, bias, tk=512, param_dtype=jnp.float32)

    out = guided_conv1_generator_forward(middle_input, w_pad, b_pad, NUM_CLASSES, tk=512)
    out = jax.block_until_ready(out)

    # Reference check in plain JAX.
    ref = middle_input.reshape(N, K) @ weight.T + bias
    assert out.shape == (N, NUM_CLASSES)
    assert jnp.allclose(out, ref, atol=1e-4, rtol=1e-4)

    print("KERNEL_OK")
</pallas_src>

<mosaic_0001>
module attributes {stable_mosaic.version = 11 : i64} {
  func.func @_linear_kernel(%arg0: i32, %arg1: memref<8x512xf32, #tpu.memory_space<vmem>>, %arg2: memref<128x512xf32, #tpu.memory_space<vmem>>, %arg3: memref<1x128xf32, #tpu.memory_space<vmem>>, %arg4: memref<8x128xf32, #tpu.memory_space<vmem>>, %arg5: memref<8x128xf32, #tpu.memory_space<vmem>>) attributes {dimension_semantics = [#tpu.dimension_semantics<arbitrary>], iteration_bounds = array<i64: 2>, scalar_prefetch = 0 : i64, scratch_operands = 1 : i64, tpu.core_type = #tpu.core_type<tc>, window_params = [{transform_indices = @transform_0, window_bounds = array<i64: 8, 512>}, {transform_indices = @transform_1, window_bounds = array<i64: 128, 512>}, {pipeline_mode = #tpu.pipeline_mode<synchronous>, transform_indices = @transform_2, window_bounds = array<i64: 1, 128>}, {pipeline_mode = #tpu.pipeline_mode<synchronous>, transform_indices = @transform_3, window_bounds = array<i64: 8, 128>}]} {
    %c0_i32 = arith.constant 0 : i32
    %0 = arith.cmpi eq, %arg0, %c0_i32 : i32
    %1 = arith.extui %0 : i1 to i32
    %c0_i32_0 = arith.constant 0 : i32
    %2 = arith.cmpi ne, %1, %c0_i32_0 : i32
    scf.if %2 {
      %cst_9 = arith.constant 0.000000e+00 : f32
      %12 = vector.broadcast %cst_9 : f32 to vector<8x128xf32>
      %c0_10 = arith.constant 0 : index
      %c0_11 = arith.constant 0 : index
      %13 = vector.load %arg5[%c0_10, %c0_11] : memref<8x128xf32, #tpu.memory_space<vmem>>, vector<8x128xf32>
      tpu.vector_store %arg5[%c0_10, %c0_11], %12 {strides = array<i32>} : memref<8x128xf32, #tpu.memory_space<vmem>>, vector<8x128xf32>,
    } else {
    }
    %c0 = arith.constant 0 : index
    %c0_1 = arith.constant 0 : index
    %3 = vector.load %arg5[%c0, %c0_1] : memref<8x128xf32, #tpu.memory_space<vmem>>, vector<8x128xf32>
    %c0_2 = arith.constant 0 : index
    %c0_3 = arith.constant 0 : index
    %4 = vector.load %arg1[%c0_2, %c0_3] : memref<8x512xf32, #tpu.memory_space<vmem>>, vector<8x512xf32>
    %c0_4 = arith.constant 0 : index
    %c0_5 = arith.constant 0 : index
    %5 = vector.load %arg2[%c0_4, %c0_5] : memref<128x512xf32, #tpu.memory_space<vmem>>, vector<128x512xf32>
    %cst = arith.constant dense<0.000000e+00> : vector<8x128xf32>
    %6 = tpu.matmul %4, %5, %cst {dimension_numbers = #tpu.dot_dimension_numbers<[1], [1], [0], [0], [0, 0, 1, 0], [], []>} : vector<8x512xf32>, vector<128x512xf32>, vector<8x128xf32> -> vector<8x128xf32>
    %7 = arith.addf %3, %6 : vector<8x128xf32>
    %c0_6 = arith.constant 0 : index
    %c0_7 = arith.constant 0 : index
    %8 = vector.load %arg5[%c0_6, %c0_7] : memref<8x128xf32, #tpu.memory_space<vmem>>, vector<8x128xf32>
    tpu.vector_store %arg5[%c0_6, %c0_7], %7 {strides = array<i32>} : memref<8x128xf32, #tpu.memory_space<vmem>>, vector<8x128xf32>,
    %c1_i32 = arith.constant 1 : i32
    %9 = arith.cmpi eq, %arg0, %c1_i32 : i32
    %10 = arith.extui %9 : i1 to i32
    %c0_i32_8 = arith.constant 0 : i32
    %11 = arith.cmpi ne, %10, %c0_i32_8 : i32
    scf.if %11 {
      %c0_9 = arith.constant 0 : index
      %c0_10 = arith.constant 0 : index
      %12 = vector.load %arg5[%c0_9, %c0_10] : memref<8x128xf32, #tpu.memory_space<vmem>>, vector<8x128xf32>
      %c0_11 = arith.constant 0 : index
      %c0_12 = arith.constant 0 : index
      %13 = vector.load %arg3[%c0_11, %c0_12] : memref<1x128xf32, #tpu.memory_space<vmem>>, vector<1x128xf32>
      %14 = vector.broadcast %13 : vector<1x128xf32> to vector<8x128xf32>
      %15 = arith.addf %12, %14 : vector<8x128xf32>
      %c0_13 = arith.constant 0 : index
      %c0_14 = arith.constant 0 : index
      %16 = vector.load %arg4[%c0_13, %c0_14] : memref<8x128xf32, #tpu.memory_space<vmem>>, vector<8x128xf32>
      tpu.vector_store %arg4[%c0_13, %c0_14], %15 {strides = array<i32>} : memref<8x128xf32, #tpu.memory_space<vmem>>, vector<8x128xf32>,
    } else {
    }
    return
  }
  func.func @transform_0(%arg0: i32) -> (i32, i32) {
    %c0_i32 = arith.constant 0 : i32
    %c0_i32_0 = arith.constant 0 : i32
    return %c0_i32, %arg0 : i32, i32
  }
  func.func @transform_1(%arg0: i32) -> (i32, i32) {
    %c0_i32 = arith.constant 0 : i32
    %c0_i32_0 = arith.constant 0 : i32
    return %c0_i32, %arg0 : i32, i32
  }
  func.func @transform_2(%arg0: i32) -> (i32, i32) {
    %c0_i32 = arith.constant 0 : i32
    %c0_i32_0 = arith.constant 0 : i32
    %c0_i32_1 = arith.constant 0 : i32
    return %c0_i32, %c0_i32_0 : i32, i32
  }
  func.func @transform_3(%arg0: i32) -> (i32, i32) {
    %c0_i32 = arith.constant 0 : i32
    %c0_i32_0 = arith.constant 0 : i32
    %c0_i32_1 = arith.constant 0 : i32
    return %c0_i32, %c0_i32_0 : i32, i32
  }
}

</mosaic_0001>

<bundles_post_ra>
// kernel: tpu_custom_call.1
= control target key start
LH: loop header
LB: loop body
LE: loop exit
PB: predicated region body
PF: predicated region fallthrough
CT: control target
= control target key end

     0   :  { %8 = vsyncpa [#allocation4], 0  ;;  %s993_s0 = inlined_call_operand.hbm [shape: f32[8,1024], index: 0, kind: input, shape index: {}]   ;;  %s994_s1 = inlined_call_operand.hbm [shape: f32[128,1024], index: 1, kind: input, shape index: {}]   ;;  %s995_s2 = inlined_call_operand.vmem [shape: f32[1,128], index: 2, kind: input, shape index: {}]   ;;  %s996_s3 = inlined_call_operand.hbm [shape: f32[8,128], index: 3, kind: output, shape index: {}]  }
   0x1   :  { %10 = vsyncpa [#allocation4 + $0x1], 0 }
   0x2   :  { %11 = vsyncpa [#allocation7], 0 }
   0x3   :  { %13 = vsyncpa [#allocation7 + $0x1], 0 }
   0x4   :  { %14 = vsyncpa [#allocation5], 0  ;;  %s754_s12 = smov 0   ;;  %s756_s13 = smov 0  }
   0x5   :  { %s758_s14 = smov 0   ;;  %s760_s15 = smov 0  }
   0x6 LB: > { %s773_s16 = sadd.s32 4294967295, %s725_s15   ;;  %s776_s17 = sadd.s32 1, %s725_s15   ;;  %s725_s15 = sphi %s760_s15, %s1005_s15   ;;  %s721_s14 = sphi %s758_s14, %s1004_s14   ;;  %s717_s13 = sphi %s756_s13, %s1003_s13   ;;  %s713_s12 = sphi %s754_s12, %s1002_s12  }
   0x7   : > { %s24_s18 = ssub.s32 %s725_s15, %s776_s17  ;;  %s27_s19 = sadd.s32 1, %s721_s14 }
   0x8   : > { %p25_p0 = scmp.eq.s32.totalorder %s24_s18, 0  ;;  %p34_p1 = scmp.ne.s32.totalorder %s721_s14, %s717_s13 }
   0x9   : > { %p35_p2 = scmp.eq.s32.totalorder %s725_s15, 0  ;;  %p40_p3 = scmp.ne.s32.totalorder %s717_s13, %s713_s12 }
   0xa   : > { %s786_s20 = scalar_select %p25_p0, %s721_s14, %s27_s19  }
   0xb   : > { %p36_p4 = por %p35_p2, %p34_p1  ;;  %p41_p5 = scmp.eq.s32.totalorder %s773_s16, 0 }
   0xc   : > { %p563_p6 = scmp.lt.s32.totalorder %s725_s15, 2  ;;  %s795_s22 = sand.u32 1, %s721_s14  }
   0xd   : > { %p790_p7 = por %p41_p5, %p40_p3  ;;  %s530_s23 = sshll.u32 %s795_s22, 5 }
   0xe   : > { %s546_s24 = sshll.u32 %s725_s15, 9  ;;  %s139_s28 = scalar_lea.vmem [#allocation3], %s530_s23 }
   0xf   : > { %s998_s21 = scalar_select %p790_p7, 1, 0 }
  0x10   : > { %s804_s27 = scalar_lea.hbm %s993_s0, %s546_s24  ;;  %s147_s29 = sshll.u32 %s139_s28, 4  ;;  %s806_s29 = int_to_ptr.vmem [resolvable:$true] %s147_s29 }
  0x11   : > { %p808_p8 = pnand %p563_p6, %p36_p4  ;;  %s533_s4 = sshll.u32 %s795_s22, 9 }
  0x12   : > { %s136_s5 = scalar_lea.sflag [#allocation4], %s795_s22  ;;  %s603_s6 = scalar_lea.hbm %s804_s27, 512 }
  0x13   : > { %p604_p9 = scmp.ne.s32.totalorder %s804_s27, %s603_s6  ;;  %p605_p10 = pneg %p808_p8 }
  0x14   : > { %s608_s9 = scalar_lea.hbm %s993_s0, 1024  ;;  %p609_p13 = scmp.lt.s32.totalorder %s804_s27, %s993_s0 }
  0x15   : > { %p606_p11 = pnand %p605_p10, %p604_p9  ;;  %p610_p0 = scmp.lt.s32.totalorder %s608_s9, %s603_s6 }
  0x17   : > { %p607_p12 = pneg %p606_p11  ;;  %p611_p1 = por %p610_p0, %p609_p13 }
  0x19   : > { %p612_p2 = pnand %p611_p1, %p607_p12 }
  0x1b   : > { %615 = shalt.err (!%p612_p2)
}
  0x1c   : > { %s616_s12 = scalar_lea.vmem %s806_s29, 512  ;;  %s727_s18 = smov [#allocation3]  }
  0x1d   : > { %p617_p3 = scmp.ne.s32.totalorder %s806_s29, %s616_s12  ;;  %s621_s19 = sshll.u32 %s727_s18, 4  ;;  %s622_s19 = int_to_ptr.vmem [resolvable:$false] %s621_s19 }
  0x1e   : > { %s623_s23 = scalar_lea.vmem %s622_s19, 1024  ;;  %p624_p6 = scmp.lt.s32.totalorder %s806_s29, %s622_s19 }
  0x1f   : > { %p619_p4 = pnand %p617_p3, %p605_p10  ;;  %p625_p9 = scmp.lt.s32.totalorder %s623_s23, %s616_s12 }
  0x21   : > { %p620_p5 = pneg %p619_p4  ;;  %p626_p11 = por %p625_p9, %p624_p6 }
  0x23   : > { %p627_p13 = pnand %p626_p11, %p620_p5 }
  0x25   : > { %630 = shalt.err (!%p627_p13)
}
  0x26   : > { %559 = dma.hbm_to_vmem [thread:$0]  (!%p808_p8), %s804_s27, 512, %s806_s29, %s136_s5  }
  0x27   : > { %s843_s28 = scalar_lea.hbm %s994_s1, %s546_s24  ;;  %p536_p12 = scmp.ge.s32.totalorder %s725_s15, 1 }
  0x28   : > { %p173_p0 = scmp.lt.s32.totalorder %s725_s15, 3  ;;  %s158_s6 = scalar_lea.vmem [#allocation6], %s533_s4 }
  0x29   : > { %s165_s7 = sshll.u32 %s158_s6, 4  ;;  %s155_s27 = scalar_lea.sflag [#allocation7], %s795_s22  ;;  %s849_s7 = int_to_ptr.vmem [resolvable:$true] %s165_s7 }
  0x2a   : > { %p851_p1 = pnand %p536_p12, %p173_p0  ;;  %s631_s29 = scalar_lea.hbm %s843_s28, 8192 }
  0x2b   : > { %p632_p2 = scmp.ne.s32.totalorder %s843_s28, %s631_s29  ;;  %s636_s15 = scalar_lea.hbm %s994_s1, 16384 }
  0x2c   : > { %p637_p5 = scmp.lt.s32.totalorder %s843_s28, %s994_s1  ;;  %p638_p6 = scmp.lt.s32.totalorder %s636_s15, %s631_s29 }
  0x2d   : > { %p634_p3 = pnand %p632_p2, %p605_p10 }
  0x2e   : > { %p639_p9 = por %p638_p6, %p637_p5 }
  0x2f   : > { %p635_p4 = pneg %p634_p3 }
  0x31   : > { %p640_p11 = pnand %p639_p9, %p635_p4 }
  0x33   : > { %643 = shalt.err (!%p640_p11)
}
  0x34   : > { %s644_s10 = scalar_lea.vmem %s849_s7, 8192  ;;  %s728_s11 = smov [#allocation6]  }
  0x35   : > { %p645_p13 = scmp.ne.s32.totalorder %s849_s7, %s644_s10  ;;  %s649_s12 = sshll.u32 %s728_s11, 4  ;;  %s650_s12 = int_to_ptr.vmem [resolvable:$false] %s649_s12 }
  0x36   : > { %s651_s18 = scalar_lea.vmem %s650_s12, 16384  ;;  %p652_p2 = scmp.lt.s32.totalorder %s849_s7, %s650_s12 }
  0x37   : > { %p647_p12 = pnand %p645_p13, %p605_p10  ;;  %p653_p3 = scmp.lt.s32.totalorder %s651_s18, %s644_s10 }
  0x39   : > { %p648_p0 = pneg %p647_p12  ;;  %p654_p7 = por %p653_p3, %p652_p2 }
  0x3b   : > { %p655_p5 = pnand %p654_p7, %p648_p0 }
  0x3d   : > { %658 = shalt.err (!%p655_p5)
}
  0x3e   : > { %s729_s19 = smov 1024   ;;  %s730_s23 = smov 512  }
  0x3f   : > { %s731_s25 = smov 32   ;;  %177 = sbr.rel (%p851_p1) target bundleno = 369 (0x171), region = 32 }
  0x40   : > { %562 = dma.hbm_to_vmem [thread:$0]  (!%p808_p8), %s843_s28, 8192, %s849_s7, %s155_s27, %s729_s19, %s730_s23, %s731_s25  }
  0x41   : > { %s179_s26 = sand.u32 (!%p851_p1), 1, %s717_s13   ;;  %p1001_p7 = scmp.ne.s32.totalorder (!%p851_p1), %s998_s21, 0 }
  0x42   : > { %s537_s6 = sshll.u32 (!%p851_p1), %s179_s26, 5  ;;  %s180_s29 = scalar_lea.sflag (!%p851_p1), [#allocation4], %s179_s26 }
  0x43   : > { %s883_s24 = scalar_lea.vmem (!%p851_p1), [#allocation3], %s537_s6 }
  0x44   : > { %700 = dma.done.wait (%p1001_p7), %s180_s29, 512  }
  0x45   : > { %702 = vsyncadd (%p1001_p7), %s180_s29, 4294966784  ;;  %s538_s5 = sshll.u32 %s179_s26, 9  ;;  %s189_s30 = scalar_lea.sflag [#allocation7], %s179_s26 }
  0x46   : > { %s889_s22 = scalar_lea.vmem [#allocation6], %s538_s5 }
  0x47   : > { %704 = dma.done.wait (%p1001_p7), %s189_s30, 8192  }
  0x48   : > { %706 = vsyncadd (%p1001_p7), %s189_s30, 4294959104  ;;  %p539_p8 = scmp.ne.s32.totalorder %s773_s16, 0 }
  0x4a   : > { %220 = sbr.rel (%p539_p8) target bundleno = 81 (0x51), region = 44 }
  0x4f   : > { %v732_v0 = vmov 0.0  }
  0x50   : > { %221 = vst [vmem:[#allocation2] sm:$0xff] %v732_v0 }
  0x51 PF: > { %v288_v1 = vld [vmem:[%s889_s22 + $0x1e8] sm:$0xff]  ;;  %v290_v2 = vld [vmem:[%s889_s22 + $0x1f8] sm:$0xff]  ;;  %v287_v3 = vld [vmem:[%s889_s22 + $0x1e0] sm:$0xff]  ;;  %p540_p10 = scmp.ne.s32.totalorder %s773_s16, 1 }
  0x52   : > { %291 = vmatprep.subr.mxu0 %v288_v1  ;;  %361 = vmatprep.subr.mxu1 %v290_v2  ;;  %v289_v4 = vld [vmem:[%s889_s22 + $0x1f0] sm:$0xff]  ;;  %v284_v5 = vld [vmem:[%s889_s22 + $0x1c8] sm:$0xff]  ;;  %v286_v6 = vld [vmem:[%s889_s22 + $0x1d8] sm:$0xff] }
  0x53   : > { %292 = vmatpush1.xpose.msra.mxu0 %v287_v3  ;;  %362 = vmatpush1.xpose.msra.mxu1 %v289_v4  ;;  %v283_v7 = vld [vmem:[%s889_s22 + $0x1c0] sm:$0xff]  ;;  %v285_v8 = vld [vmem:[%s889_s22 + $0x1d0] sm:$0xff]  ;;  %v280_v9 = vld [vmem:[%s889_s22 + $0x1a8] sm:$0xff] }
  0x54   : > { %293 = vmatprep.subr.mxu0 %v284_v5  ;;  %363 = vmatprep.subr.mxu1 %v286_v6  ;;  %v282_v10 = vld [vmem:[%s889_s22 + $0x1b8] sm:$0xff]  ;;  %v279_v11 = vld [vmem:[%s889_s22 + $0x1a0] sm:$0xff]  ;;  %v281_v12 = vld [vmem:[%s889_s22 + $0x1b0] sm:$0xff] }
  0x55   : > { %v276_v13 = vld [vmem:[%s889_s22 + $0x188] sm:$0xff]  ;;  %v278_v14 = vld [vmem:[%s889_s22 + $0x198] sm:$0xff]  ;;  %v275_v15 = vld [vmem:[%s889_s22 + $0x180] sm:$0xff] }
  0x56   : > { %v277_v16 = vld [vmem:[%s889_s22 + $0x190] sm:$0xff]  ;;  %v272_v17 = vld [vmem:[%s889_s22 + $0x168] sm:$0xff]  ;;  %v274_v18 = vld [vmem:[%s889_s22 + $0x178] sm:$0xff] }
  0x57   : > { %294 = vmatpush1.xpose.msra.mxu0 %v283_v7  ;;  %364 = vmatpush1.xpose.msra.mxu1 %v285_v8  ;;  %v271_v19 = vld [vmem:[%s889_s22 + $0x160] sm:$0xff]  ;;  %v273_v20 = vld [vmem:[%s889_s22 + $0x170] sm:$0xff]  ;;  %v268_v21 = vld [vmem:[%s889_s22 + $0x148] sm:$0xff] }
  0x58   : > { %295 = vmatprep.subr.mxu0 %v280_v9  ;;  %365 = vmatprep.subr.mxu1 %v282_v10  ;;  %v270_v22 = vld [vmem:[%s889_s22 + $0x158] sm:$0xff]  ;;  %v267_v23 = vld [vmem:[%s889_s22 + $0x140] sm:$0xff]  ;;  %v269_v24 = vld [vmem:[%s889_s22 + $0x150] sm:$0xff] }
  0x59   : > { %v264_v25 = vld [vmem:[%s889_s22 + $0x128] sm:$0xff]  ;;  %v266_v26 = vld [vmem:[%s889_s22 + $0x138] sm:$0xff]  ;;  %v263_v29 = vld [vmem:[%s889_s22 + $0x120] sm:$0xff] }
  0x5a   : > { %v224_v27 = vld [vmem:[%s883_s24 + $0x8] sm:$0xff]  ;;  %v226_v28 = vld [vmem:[%s883_s24 + $0x18] sm:$0xff]  ;;  %v265_v30 = vld [vmem:[%s889_s22 + $0x130] sm:$0xff] }
  0x5b   : > { %296 = vmatpush1.xpose.msra.mxu0 %v279_v11  ;;  %366 = vmatpush1.xpose.msra.mxu1 %v281_v12  ;;  %v260_v31 = vld [vmem:[%s889_s22 + $0x108] sm:$0xff]  ;;  %v262_v32 = vld [vmem:[%s889_s22 + $0x118] sm:$0xff]  ;;  %v259_v33 = vld [vmem:[%s889_s22 + $0x100] sm:$0xff] }
  0x5c   : > { %297 = vmatprep.subr.mxu0 %v276_v13  ;;  %367 = vmatprep.subr.mxu1 %v278_v14  ;;  %v261_v34 = vld [vmem:[%s889_s22 + $0x110] sm:$0xff]  ;;  %v256_v35 = vld [vmem:[%s889_s22 + $0xe8] sm:$0xff]  ;;  %v258_v36 = vld [vmem:[%s889_s22 + $0xf8] sm:$0xff] }
  0x5d   : > { %355 = vmatprep.mubr.f32.mxu0 %v224_v27  ;;  %425 = vmatprep.mubr.f32.mxu1 %v226_v28  ;;  %v255_v37 = vld [vmem:[%s889_s22 + $0xe0] sm:$0xff]  ;;  %v257_v38 = vld [vmem:[%s889_s22 + $0xf0] sm:$0xff]  ;;  %v252_v39 = vld [vmem:[%s889_s22 + $0xc8] sm:$0xff] }
  0x5e   : > { %v254_v40 = vld [vmem:[%s889_s22 + $0xd8] sm:$0xff]  ;;  %v251_v41 = vld [vmem:[%s889_s22 + $0xc0] sm:$0xff]  ;;  %v253_v42 = vld [vmem:[%s889_s22 + $0xd0] sm:$0xff] }
  0x5f   : > { %298 = vmatpush1.xpose.msra.mxu0 %v275_v15  ;;  %368 = vmatpush1.xpose.msra.mxu1 %v277_v16  ;;  %v248_v43 = vld [vmem:[%s889_s22 + $0xa8] sm:$0xff]  ;;  %v250_v44 = vld [vmem:[%s889_s22 + $0xb8] sm:$0xff]  ;;  %v247_v45 = vld [vmem:[%s889_s22 + $0xa0] sm:$0xff] }
  0x60   : > { %299 = vmatprep.subr.mxu0 %v272_v17  ;;  %369 = vmatprep.subr.mxu1 %v274_v18  ;;  %v249_v46 = vld [vmem:[%s889_s22 + $0xb0] sm:$0xff]  ;;  %v244_v47 = vld [vmem:[%s889_s22 + $0x88] sm:$0xff]  ;;  %v246_v48 = vld [vmem:[%s889_s22 + $0x98] sm:$0xff] }
  0x61   : > { %v243_v49 = vld [vmem:[%s889_s22 + $0x80] sm:$0xff]  ;;  %v245_v50 = vld [vmem:[%s889_s22 + $0x90] sm:$0xff]  ;;  %v240_v51 = vld [vmem:[%s889_s22 + $0x68] sm:$0xff] }
  0x62   : > { %v242_v52 = vld [vmem:[%s889_s22 + $0x78] sm:$0xff]  ;;  %v239_v53 = vld [vmem:[%s889_s22 + $0x60] sm:$0xff]  ;;  %v241_v54 = vld [vmem:[%s889_s22 + $0x70] sm:$0xff] }
  0x63   : > { %300 = vmatpush1.xpose.msra.mxu0 %v271_v19  ;;  %370 = vmatpush1.xpose.msra.mxu1 %v273_v20  ;;  %v236_v55 = vld [vmem:[%s889_s22 + $0x48] sm:$0xff]  ;;  %v238_v56 = vld [vmem:[%s889_s22 + $0x58] sm:$0xff]  ;;  %v235_v57 = vld [vmem:[%s889_s22 + $0x40] sm:$0xff] }
  0x64   : > { %301 = vmatprep.subr.mxu0 %v268_v21  ;;  %371 = vmatprep.subr.mxu1 %v270_v22  ;;  %v237_v58 = vld [vmem:[%s889_s22 + $0x50] sm:$0xff]  ;;  %v232_v59 = vld [vmem:[%s889_s22 + $0x28] sm:$0xff]  ;;  %v234_v60 = vld [vmem:[%s889_s22 + $0x38] sm:$0xff] }
  0x65   : > { %v231_v61 = vld [vmem:[%s889_s22 + $0x20] sm:$0xff]  ;;  %v233_v62 = vld [vmem:[%s889_s22 + $0x30] sm:$0xff]  ;;  %v228_v63 = vld [vmem:[%s889_s22 + $0x8] sm:$0xff] }
  0x66   : > { %v230_v0 = vld [vmem:[%s889_s22 + $0x18] sm:$0xff]  ;;  %v227_v1 = vld [vmem:[%s889_s22] sm:$0xff]  ;;  %v229_v2 = vld [vmem:[%s889_s22 + $0x10] sm:$0xff] }
  0x67   : > { %302 = vmatpush1.xpose.msra.mxu0 %v267_v23  ;;  %372 = vmatpush1.xpose.msra.mxu1 %v269_v24  ;;  %v223_v3 = vld [vmem:[%s883_s24] sm:$0xff]  ;;  %v225_v4 = vld [vmem:[%s883_s24 + $0x10] sm:$0xff]  ;;  %v222_v6 = vld [vmem:[#allocation2] sm:$0xff] }
  0x68   : > { %303 = vmatprep.subr.mxu0 %v264_v25  ;;  %373 = vmatprep.subr.mxu1 %v266_v26 }
  0x6b   : > { %304 = vmatpush1.xpose.msra.mxu0 %v263_v29  ;;  %374 = vmatpush1.xpose.msra.mxu1 %v265_v30 }
  0x6c   : > { %305 = vmatprep.subr.mxu0 %v260_v31  ;;  %375 = vmatprep.subr.mxu1 %v262_v32 }
  0x6f   : > { %306 = vmatpush1.xpose.msra.mxu0 %v259_v33  ;;  %376 = vmatpush1.xpose.msra.mxu1 %v261_v34 }
  0x70   : > { %307 = vmatprep.subr.mxu0 %v256_v35  ;;  %377 = vmatprep.subr.mxu1 %v258_v36 }
  0x73   : > { %308 = vmatpush1.xpose.msra.mxu0 %v255_v37  ;;  %378 = vmatpush1.xpose.msra.mxu1 %v257_v38 }
  0x74   : > { %309 = vmatprep.subr.mxu0 %v252_v39  ;;  %379 = vmatprep.subr.mxu1 %v254_v40 }
  0x77   : > { %310 = vmatpush1.xpose.msra.mxu0 %v251_v41  ;;  %380 = vmatpush1.xpose.msra.mxu1 %v253_v42 }
  0x78   : > { %311 = vmatprep.subr.mxu0 %v248_v43  ;;  %381 = vmatprep.subr.mxu1 %v250_v44 }
  0x7b   : > { %312 = vmatpush1.xpose.msra.mxu0 %v247_v45  ;;  %382 = vmatpush1.xpose.msra.mxu1 %v249_v46 }
  0x7c   : > { %313 = vmatprep.subr.mxu0 %v244_v47  ;;  %383 = vmatprep.subr.mxu1 %v246_v48 }
  0x7f   : > { %314 = vmatpush1.xpose.msra.mxu0 %v243_v49  ;;  %384 = vmatpush1.xpose.msra.mxu1 %v245_v50 }
  0x80   : > { %315 = vmatprep.subr.mxu0 %v240_v51  ;;  %385 = vmatprep.subr.mxu1 %v242_v52 }
  0x83   : > { %316 = vmatpush1.xpose.msra.mxu0 %v239_v53  ;;  %386 = vmatpush1.xpose.msra.mxu1 %v241_v54 }
  0x84   : > { %317 = vmatprep.subr.mxu0 %v236_v55  ;;  %387 = vmatprep.subr.mxu1 %v238_v56 }
  0x87   : > { %318 = vmatpush1.xpose.msra.mxu0 %v235_v57  ;;  %388 = vmatpush1.xpose.msra.mxu1 %v237_v58 }
  0x88   : > { %319 = vmatprep.subr.mxu0 %v232_v59  ;;  %389 = vmatprep.subr.mxu1 %v234_v60 }
  0x8b   : > { %320 = vmatpush1.xpose.msra.mxu0 %v231_v61  ;;  %390 = vmatpush1.xpose.msra.mxu1 %v233_v62 }
  0x8c   : > { %321 = vmatprep.subr.mxu0 %v228_v63  ;;  %391 = vmatprep.subr.mxu1 %v230_v0 }
  0x8f   : > { %322 = vmatpush1.xpose.msra.mxu0 %v227_v1  ;;  %392 = vmatpush1.xpose.msra.mxu1 %v229_v2 }
  0x92   : > { %356 = vmatmul.mubr.f32.vlgmr.msra.gmra.mxu0 %v223_v3  ;;  %426 = vmatmul.mubr.f32.vlgmr.msra.gmra.mxu1 %v225_v4 }
 0x152   : > { %v357_v5 = vpop.f32.mrf.mxu0  ;;  %v427_v7 = vpop.f32.mrf.mxu1 }
 0x153   : > { %v428_v8 = vadd.f32 %v427_v7, %v357_v5  ;;  %436 = sbr.rel (%p540_p10) target bundleno = 354 (0x162), region = 48 }
 0x154   : > { %v359_v9 = vpop.f32.mrf.mxu0  ;;  %v429_v10 = vpop.f32.mrf.mxu1 }
 0x155   : > { %v431_v11 = vadd.f32 %v428_v8, %v222_v6 }
 0x157   : > { %432 = vst [vmem:[#allocation2] sm:$0xff] %v431_v11 }
 0x158   : > { %v541_v13 = vld [vmem:[%s995_s2] ss:$0 sm:$0xff] }
 0x15e   : > { %v437_v12 = vld [vmem:[#allocation2] sm:$0xff] }
 0x15f   : > { %v445_v14 = vadd.f32 %v541_v13, %v437_v12 }
 0x161   : > { %446 = vst [vmem:[#allocation8] sm:$0xff] %v445_v14 }
 0x162 PF: > { %p564_p1 = scmp.eq.s32.totalorder %s773_s16, 1  ;;  %s733_s7 = smov [#allocation8]  }
 0x163   : > { %s454_s8 = sshll.u32 %s733_s7, 4  ;;  %s455_s8 = int_to_ptr.vmem [resolvable:$true] %s454_s8 }
 0x164   : > { %s659_s27 = scalar_lea.vmem %s455_s8, 128  ;;  %p666_p11 = scmp.lt.s32.totalorder %s455_s8, %s455_s8 }
 0x165   : > { %p660_p4 = scmp.ne.s32.totalorder %s455_s8, %s659_s27  ;;  %p667_p13 = scmp.lt.s32.totalorder %s659_s27, %s659_s27 }
 0x167   : > { %p661_p6 = pnand %p660_p4, %p564_p1  ;;  %p668_p12 = por %p667_p13, %p666_p11 }
 0x169   : > { %p662_p9 = pneg %p661_p6 }
 0x16b   : > { %p669_p0 = pnand %p668_p12, %p662_p9 }
 0x16d   : > { %672 = shalt.err (!%p669_p0)
}
 0x16e   : > { %553 = dma.vmem_to_hbm [thread:$0]  (%p564_p1), %s455_s8, 128, %s996_s3, [#allocation5]  }
 0x16f   : > { %708 = dma.done.wait (%p564_p1), [#allocation5], 128  }
 0x170   : > { %710 = vsyncadd (%p564_p1), [#allocation5], 4294967168 }
 0x171 PF: > { %p17_p2 = scmp.ge.s32.totalorder %s776_s17, 4   ;;  %s1002_s12 = smov %s717_s13 }
 0x172   : > { %s1003_s13 = smov %s721_s14  ;;  %s1004_s14 = smov %s786_s20 }
 0x173   : > { %s1005_s15 = smov %s776_s17  ;;  %19 = sbr.rel (!%p17_p2) target bundleno = 6 (0x6), region = 90 }
 0x178   :  { %467 = vsyncpa [#allocation4], 1 }
 0x179   :  { %469 = vsyncpa [#allocation4 + $0x1], 1 }
 0x17a   :  { %470 = vsyncpa [#allocation7], 1 }
 0x17b   :  { %472 = vsyncpa [#allocation7 + $0x1], 1 }
 0x17c   :  { %473 = vsyncpa [#allocation5], 1 }
 0x17d   :  { %475 = vsyncpa [#allocation5 + $0x1], 1 }

</bundles_post_ra>
